<compile_context>
chip_gen: v7x
topology: tpu7x:2x2x1
jax: 0.10.0
libtpu: 0.0.40
codegen_flags: <defaults>
</compile_context>

<pallas_src>
import functools

import jax
import jax.numpy as jnp
from jax.experimental import pallas as pl
from jax.experimental.pallas import tpu as pltpu

_BN_EPS = 1e-5
_LANE = 128
_SUBLANE = 16  # batch-tile granularity valid for both f32 and bf16 operands


def _round_up(n, m):
    return ((n + m - 1) // m) * m


def _pad2d(a, rows, cols):
    return jnp.pad(a, ((0, rows - a.shape[0]), (0, cols - a.shape[1])))


def _tpu_hw():
    """Best-effort TPU generation / VMEM probe with conservative fallbacks."""
    kind = ""
    try:
        kind = jax.devices()[0].device_kind.lower()
    except Exception:
        pass
    is_v7 = ("v7" in kind) or ("tpu7" in kind) or ("7x" in kind)
    is_v6 = ("v6" in kind) or ("tpu6" in kind)
    is_v5 = ("v5" in kind) or ("tpu5" in kind)
    vmem_capacity = (64 << 20) if is_v7 else (128 << 20)
    try:  # prefer the real number when the query is available
        vmem_capacity = int(pltpu.get_tpu_info().vmem_capacity_bytes)
    except Exception:
        pass
    # Default scoped-VMEM limit: 32 MiB on v6e/v7x, assume 16 MiB otherwise (v5e).
    default_scoped = (32 << 20) if (is_v6 or is_v7) else (16 << 20)
    return dict(is_v7=is_v7, is_v6=is_v6, is_v5=is_v5,
                vmem_capacity=vmem_capacity, default_scoped=default_scoped)


# --------------------------------------------------------------------------- kernel ----
def _mlp_kernel(x_ref, w1_ref, w2_ref, w3_ref, w4_ref, w5_ref, b_ref, o_ref):
    """One batch tile: 5 matmuls + bias + ReLU (BN already folded into w2/b2, w4/b4)."""
    cdt = w1_ref.dtype                 # MXU operand dtype (f32 or bf16); acc is f32
    h_p = w1_ref.shape[1]
    n_out = w5_ref.shape[1]
    b = b_ref[...]                     # (8, W) packed f32 biases, one tiny resident tile

    h = jnp.dot(x_ref[...].astype(cdt), w1_ref[...], preferred_element_type=jnp.float32)
    h = jnp.maximum(h + b[0, :h_p], 0.0)                       # linear1 + relu1

    h = jnp.dot(h.astype(cdt), w2_ref[...], preferred_element_type=jnp.float32)
    h = jnp.maximum(h + b[1, :h_p], 0.0)                       # linear2 + BN1 + relu2
    # dropout1(p=0.0) -> identity

    h = jnp.dot(h.astype(cdt), w3_ref[...], preferred_element_type=jnp.float32)
    h = jnp.maximum(h + b[2, :h_p], 0.0)                       # linear3 + relu3

    h = jnp.dot(h.astype(cdt), w4_ref[...], preferred_element_type=jnp.float32)
    h = jnp.maximum(h + b[3, :h_p], 0.0)                       # linear4 + BN2 + relu4

    out = jnp.dot(h.astype(cdt), w5_ref[...], preferred_element_type=jnp.float32)
    o_ref[...] = (out + b[4, :n_out]).astype(o_ref.dtype)      # linear5


# ------------------------------------------------------------------------- forward ----
def _forward_impl(x, w1, w2, w3, w4, w5, b_pack, *, block_batch, is_v7,
                  vmem_capacity, default_scoped_vmem):
    batch, in_features = x.shape
    h_p = w1.shape[1]
    out_features = w5.shape[1]
    itemsize = w1.dtype.itemsize

    # ---- choose the batch tile ----
    batch_r = _round_up(batch, _SUBLANE)
    tb = min(_round_up(block_batch, _SUBLANE), batch_r)
    if is_v7 and batch_r >= 2 * _SUBLANE:
        # keep >= 2 grid steps so the "parallel" batch axis shards across both TensorCores
        tb = min(tb, max(_SUBLANE, (batch_r // 2) // _SUBLANE * _SUBLANE))

    w_bytes = (w1.size + w2.size + w3.size + w4.size + w5.size) * itemsize

    def vmem_need(tb_):
        # Weights/bias use constant index_maps (fetched once) but are conservatively
        # counted at the default 2x buffer multiplicity; intermediates included.
        return (2 * (w_bytes + b_pack.size * 4)
                + 2 * tb_ * in_features * x.dtype.itemsize      # streamed x tile (x2)
                + 2 * tb_ * out_features * 4                    # streamed out tile (x2)
                + 3 * tb_ * h_p * 4                             # live f32 intermediates
                + tb_ * h_p * itemsize)                         # cast copy feeding the MXU

    budget = int(0.75 * vmem_capacity)                          # 48 MiB on v7x, 96 MiB v5e/v6e
    while tb > _SUBLANE and vmem_need(tb) > budget:
        tb = max(_SUBLANE, (tb // 2) // _SUBLANE * _SUBLANE)

    # Rebalance tiles to minimize batch padding for the chosen number of steps.
    n_tiles = -(-batch_r // tb)
    tb = _round_up(-(-batch_r // n_tiles), _SUBLANE)
    batch_p = tb * n_tiles

    x_in = x if batch_p == batch else jnp.pad(x, ((0, batch_p - batch), (0, 0)))

    const = lambda i: (0, 0)  # resident weights / biases: same block every step

    compiler_kwargs = dict(dimension_semantics=("parallel",))
    need = vmem_need(tb)
    limit = min(max(int(need * 3 // 2), default_scoped_vmem), budget)
    if limit > default_scoped_vmem:                             # only ever raise the limit
        compiler_kwargs["vmem_limit_bytes"] = limit

    flops = 2 * batch_p * (in_features * h_p + 3 * h_p * h_p + h_p * out_features)
    bytes_accessed = (batch_p * in_features * x.dtype.itemsize + w_bytes
                      + b_pack.size * 4 + batch_p * out_features * 4)

    out = pl.pallas_call(
        _mlp_kernel,
        out_shape=jax.ShapeDtypeStruct((batch_p, out_features), jnp.float32),
        grid_spec=pltpu.PrefetchScalarGridSpec(
            num_scalar_prefetch=0,
            grid=(batch_p // tb,),
            in_specs=[
                # x: streamed per batch tile; last dim at full size (no lane padding).
                pl.BlockSpec((tb, in_features), lambda i: (i, 0)),
                pl.BlockSpec((in_features, h_p), const),        # w1
                pl.BlockSpec((h_p, h_p), const),                # w2 (BN1 folded)
                pl.BlockSpec((h_p, h_p), const),                # w3
                pl.BlockSpec((h_p, h_p), const),                # w4 (BN2 folded)
                pl.BlockSpec((h_p, out_features), const),       # w5 (true output width)
                pl.BlockSpec((8, b_pack.shape[1]), const),      # packed biases (f32)
            ],
            # Output at its true width: masked vst, but 8-16x fewer HBM bytes.
            out_specs=pl.BlockSpec((tb, out_features), lambda i: (i, 0)),
        ),
        compiler_params=pltpu.CompilerParams(**compiler_kwargs),
        cost_estimate=pl.CostEstimate(
            flops=flops, transcendentals=0, bytes_accessed=bytes_accessed),
    )(x_in, w1, w2, w3, w4, w5, b_pack)

    return out[:batch] if batch_p != batch else out


# ------------------------------------------------------------- one-time preparation ----
def _prepare_params(params, compute_dtype):
    in_features = params["w1"].shape[0]
    hidden = params["w1"].shape[1]
    out_features = params["w5"].shape[1]

    # Fold eval-mode BatchNorm1d (running stats) into the preceding Linear (f32 math).
    s1 = params["g1"] * jax.lax.rsqrt(params["v1"] + _BN_EPS)
    w2f = params["w2"] * s1
    b2f = (params["b2"] - params["m1"]) * s1 + params["be1"]
    s2 = params["g2"] * jax.lax.rsqrt(params["v2"] + _BN_EPS)
    w4f = params["w4"] * s2
    b4f = (params["b4"] - params["m2"]) * s2 + params["be2"]

    # Pad only the hidden axes to 128 lanes; in/out feature axes stay at true size.
    h_p = _round_up(hidden, _LANE)
    w1 = _pad2d(params["w1"], in_features, h_p).astype(compute_dtype)
    w2 = _pad2d(w2f, h_p, h_p).astype(compute_dtype)
    w3 = _pad2d(params["w3"], h_p, h_p).astype(compute_dtype)
    w4 = _pad2d(w4f, h_p, h_p).astype(compute_dtype)
    w5 = _pad2d(params["w5"], h_p, out_features).astype(compute_dtype)

    # Pack all 5 bias rows (kept f32) into one (8, W) tile -> a single tiny DMA.
    width = max(h_p, _round_up(out_features, _LANE))
    b_pack = jnp.zeros((8, width), jnp.float32)
    b_pack = b_pack.at[0, :hidden].set(params["b1"][0])
    b_pack = b_pack.at[1, :hidden].set(b2f[0])
    b_pack = b_pack.at[2, :hidden].set(params["b3"][0])
    b_pack = b_pack.at[3, :hidden].set(b4f[0])
    b_pack = b_pack.at[4, :out_features].set(params["b5"][0])

    prep = (w1, w2, w3, w4, w5, b_pack)
    return tuple(jax.block_until_ready(t) for t in prep)


def make_classifier(params, *, block_batch=2048, compute_dtype=None):
    """Fold/pad/cast/pack the params ONCE; return a jitted forward fn x -> logits."""
    hw = _tpu_hw()
    if compute_dtype is None:
        # bf16 MXU operands on v6e/v7x (f32 accumulation); keep f32 on v5e (no bf16 VPU).
        compute_dtype = jnp.bfloat16 if (hw["is_v6"] or hw["is_v7"]) else jnp.float32

    prep = _prepare_params(params, compute_dtype)

    fwd = jax.jit(functools.partial(
        _forward_impl,
        block_batch=int(block_batch),
        is_v7=bool(hw["is_v7"]),
        vmem_capacity=int(hw["vmem_capacity"]),
        default_scoped_vmem=int(hw["default_scoped"]),
    ))

    def forward(x):
        return fwd(x, *prep)

    return forward


# ---------------------------------------------------------------------------- params ----
def init_params(key, input_size, hidden_size, output_size):
    """Deterministic synthetic params (PyTorch-like init, weights stored (in, out))."""
    ks = jax.random.split(key, 16)

    def lin(kw, kb, fan_in, fan_out):
        bound = 1.0 / jnp.sqrt(fan_in)
        w = jax.random.uniform(kw, (fan_in, fan_out), jnp.float32, -bound, bound)
        b = jax.random.uniform(kb, (1, fan_out), jnp.float32, -bound, bound)
        return w, b

    w1, b1 = lin(ks[0], ks[1], input_size, hidden_size)
    w2, b2 = lin(ks[2], ks[3], hidden_size, hidden_size)
    w3, b3 = lin(ks[4], ks[5], hidden_size, hidden_size)
    w4, b4 = lin(ks[6], ks[7], hidden_size, hidden_size)
    w5, b5 = lin(ks[8], ks[9], hidden_size, output_size)

    g1 = 1.0 + 0.1 * jax.random.normal(ks[10], (1, hidden_size), jnp.float32)
    be1 = 0.1 * jax.random.normal(ks[11], (1, hidden_size), jnp.float32)
    m1 = 0.1 * jax.random.normal(ks[12], (1, hidden_size), jnp.float32)
    v1 = 1.0 + 0.1 * jax.random.uniform(ks[13], (1, hidden_size), jnp.float32)

    g2 = 1.0 + 0.1 * jax.random.normal(ks[14], (1, hidden_size), jnp.float32)
    be2 = 0.1 * jax.random.normal(ks[15], (1, hidden_size), jnp.float32)
    m2 = jnp.zeros((1, hidden_size), jnp.float32)
    v2 = jnp.ones((1, hidden_size), jnp.float32)

    return dict(
        w1=w1, b1=b1, w2=w2, b2=b2, g1=g1, be1=be1, m1=m1, v1=v1,
        w3=w3, b3=b3, w4=w4, b4=b4, g2=g2, be2=be2, m2=m2, v2=v2,
        w5=w5, b5=b5,
    )


def _reference(x, p):
    """Pure-JAX reference with the original (un-folded) eval-mode BN math."""
    h = jnp.maximum(x @ p["w1"] + p["b1"], 0.0)
    h = h @ p["w2"] + p["b2"]
    h = (h - p["m1"]) * jax.lax.rsqrt(p["v1"] + _BN_EPS) * p["g1"] + p["be1"]
    h = jnp.maximum(h, 0.0)
    h = jnp.maximum(h @ p["w3"] + p["b3"], 0.0)
    h = h @ p["w4"] + p["b4"]
    h = (h - p["m2"]) * jax.lax.rsqrt(p["v2"] + _BN_EPS) * p["g2"] + p["be2"]
    h = jnp.maximum(h, 0.0)
    return h @ p["w5"] + p["b5"]


if __name__ == "__main__":
    INPUT_SIZE, HIDDEN_SIZE, OUTPUT_SIZE = 16, 32, 8
    BATCH = 8

    key = jax.random.PRNGKey(0)
    kx, kp = jax.random.split(key)
    x = jax.random.normal(kx, (BATCH, INPUT_SIZE), jnp.float32)
    params = init_params(kp, INPUT_SIZE, HIDDEN_SIZE, OUTPUT_SIZE)

    ref = _reference(x, params)

    # f32 MXU operands — tight tolerance vs the un-folded reference.
    fwd_f32 = make_classifier(params, compute_dtype=jnp.float32)
    out_f32 = jax.block_until_ready(fwd_f32(x))
    assert out_f32.shape == (BATCH, OUTPUT_SIZE)
    assert jnp.allclose(out_f32, ref, atol=1e-4, rtol=1e-4)
    # Second call reuses the prepared params / compiled executable (no re-prep).
    out_f32b = jax.block_until_ready(fwd_f32(x))
    assert jnp.allclose(out_f32b, out_f32)

    # Auto dtype: bf16 operands on v6e/v7x (f32 accumulation), f32 on v5e.
    fwd_auto = make_classifier(params)
    out_auto = jax.block_until_ready(fwd_auto(x))
    assert out_auto.shape == (BATCH, OUTPUT_SIZE)
    assert jnp.allclose(out_auto, ref, atol=1e-1, rtol=1e-1)

    print("KERNEL_OK")
</pallas_src>

<mosaic_0001>
module attributes {stable_mosaic.version = 11 : i64} {
  func.func @_mlp_kernel(%arg0: i32, %arg1: memref<16x16xf32, #tpu.memory_space<vmem>>, %arg2: memref<16x128xf32, #tpu.memory_space<vmem>>, %arg3: memref<128x128xf32, #tpu.memory_space<vmem>>, %arg4: memref<128x128xf32, #tpu.memory_space<vmem>>, %arg5: memref<128x128xf32, #tpu.memory_space<vmem>>, %arg6: memref<128x8xf32, #tpu.memory_space<vmem>>, %arg7: memref<8x128xf32, #tpu.memory_space<vmem>>, %arg8: memref<16x8xf32, #tpu.memory_space<vmem>>) attributes {dimension_semantics = [#tpu.dimension_semantics<parallel>], iteration_bounds = array<i64: 1>, scalar_prefetch = 0 : i64, scratch_operands = 0 : i64, tpu.core_type = #tpu.core_type<tc>, window_params = [{transform_indices = @transform_0, window_bounds = array<i64: 16, 16>}, {pipeline_mode = #tpu.pipeline_mode<synchronous>, transform_indices = @transform_1, window_bounds = array<i64: 16, 128>}, {pipeline_mode = #tpu.pipeline_mode<synchronous>, transform_indices = @transform_2, window_bounds = array<i64: 128, 128>}, {pipeline_mode = #tpu.pipeline_mode<synchronous>, transform_indices = @transform_3, window_bounds = array<i64: 128, 128>}, {pipeline_mode = #tpu.pipeline_mode<synchronous>, transform_indices = @transform_4, window_bounds = array<i64: 128, 128>}, {pipeline_mode = #tpu.pipeline_mode<synchronous>, transform_indices = @transform_5, window_bounds = array<i64: 128, 8>}, {pipeline_mode = #tpu.pipeline_mode<synchronous>, transform_indices = @transform_6, window_bounds = array<i64: 8, 128>}, {transform_indices = @transform_7, window_bounds = array<i64: 16, 8>}]} {
    %c0 = arith.constant 0 : index
    %c0_0 = arith.constant 0 : index
    %0 = vector.load %arg7[%c0, %c0_0] : memref<8x128xf32, #tpu.memory_space<vmem>>, vector<8x128xf32>
    %c0_1 = arith.constant 0 : index
    %c0_2 = arith.constant 0 : index
    %1 = vector.load %arg1[%c0_1, %c0_2] : memref<16x16xf32, #tpu.memory_space<vmem>>, vector<16x16xf32>
    %c0_3 = arith.constant 0 : index
    %c0_4 = arith.constant 0 : index
    %2 = vector.load %arg2[%c0_3, %c0_4] : memref<16x128xf32, #tpu.memory_space<vmem>>, vector<16x128xf32>
    %cst = arith.constant dense<0.000000e+00> : vector<16x128xf32>
    %3 = tpu.matmul %1, %2, %cst {dimension_numbers = #tpu.dot_dimension_numbers<[1], [0], [0], [1], [0, 0, 1, 1], [], []>} : vector<16x16xf32>, vector<16x128xf32>, vector<16x128xf32> -> vector<16x128xf32>
    %4 = vector.extract_strided_slice %0 {offsets = [0, 0], sizes = [1, 128], strides = [1, 1]} : vector<8x128xf32> to vector<1x128xf32>
    %5 = vector.shape_cast %4 : vector<1x128xf32> to vector<128xf32>
    %6 = vector.shape_cast %5 : vector<128xf32> to vector<1x128xf32>
    %7 = vector.broadcast %6 : vector<1x128xf32> to vector<16x128xf32>
    %8 = arith.addf %3, %7 : vector<16x128xf32>
    %cst_5 = arith.constant 0.000000e+00 : f32
    %9 = vector.broadcast %cst_5 : f32 to vector<16x128xf32>
    %10 = arith.maximumf %8, %9 : vector<16x128xf32>
    %c0_6 = arith.constant 0 : index
    %c0_7 = arith.constant 0 : index
    %11 = vector.load %arg3[%c0_6, %c0_7] : memref<128x128xf32, #tpu.memory_space<vmem>>, vector<128x128xf32>
    %cst_8 = arith.constant dense<0.000000e+00> : vector<16x128xf32>
    %12 = tpu.matmul %10, %11, %cst_8 {dimension_numbers = #tpu.dot_dimension_numbers<[1], [0], [0], [1], [0, 0, 1, 1], [], []>} : vector<16x128xf32>, vector<128x128xf32>, vector<16x128xf32> -> vector<16x128xf32>
    %13 = vector.extract_strided_slice %0 {offsets = [1, 0], sizes = [1, 128], strides = [1, 1]} : vector<8x128xf32> to vector<1x128xf32>
    %14 = vector.shape_cast %13 : vector<1x128xf32> to vector<128xf32>
    %15 = vector.shape_cast %14 : vector<128xf32> to vector<1x128xf32>
    %16 = vector.broadcast %15 : vector<1x128xf32> to vector<16x128xf32>
    %17 = arith.addf %12, %16 : vector<16x128xf32>
    %cst_9 = arith.constant 0.000000e+00 : f32
    %18 = vector.broadcast %cst_9 : f32 to vector<16x128xf32>
    %19 = arith.maximumf %17, %18 : vector<16x128xf32>
    %c0_10 = arith.constant 0 : index
    %c0_11 = arith.constant 0 : index
    %20 = vector.load %arg4[%c0_10, %c0_11] : memref<128x128xf32, #tpu.memory_space<vmem>>, vector<128x128xf32>
    %cst_12 = arith.constant dense<0.000000e+00> : vector<16x128xf32>
    %21 = tpu.matmul %19, %20, %cst_12 {dimension_numbers = #tpu.dot_dimension_numbers<[1], [0], [0], [1], [0, 0, 1, 1], [], []>} : vector<16x128xf32>, vector<128x128xf32>, vector<16x128xf32> -> vector<16x128xf32>
    %22 = vector.extract_strided_slice %0 {offsets = [2, 0], sizes = [1, 128], strides = [1, 1]} : vector<8x128xf32> to vector<1x128xf32>
    %23 = vector.shape_cast %22 : vector<1x128xf32> to vector<128xf32>
    %24 = vector.shape_cast %23 : vector<128xf32> to vector<1x128xf32>
    %25 = vector.broadcast %24 : vector<1x128xf32> to vector<16x128xf32>
    %26 = arith.addf %21, %25 : vector<16x128xf32>
    %cst_13 = arith.constant 0.000000e+00 : f32
    %27 = vector.broadcast %cst_13 : f32 to vector<16x128xf32>
    %28 = arith.maximumf %26, %27 : vector<16x128xf32>
    %c0_14 = arith.constant 0 : index
    %c0_15 = arith.constant 0 : index
    %29 = vector.load %arg5[%c0_14, %c0_15] : memref<128x128xf32, #tpu.memory_space<vmem>>, vector<128x128xf32>
    %cst_16 = arith.constant dense<0.000000e+00> : vector<16x128xf32>
    %30 = tpu.matmul %28, %29, %cst_16 {dimension_numbers = #tpu.dot_dimension_numbers<[1], [0], [0], [1], [0, 0, 1, 1], [], []>} : vector<16x128xf32>, vector<128x128xf32>, vector<16x128xf32> -> vector<16x128xf32>
    %31 = vector.extract_strided_slice %0 {offsets = [3, 0], sizes = [1, 128], strides = [1, 1]} : vector<8x128xf32> to vector<1x128xf32>
    %32 = vector.shape_cast %31 : vector<1x128xf32> to vector<128xf32>
    %33 = vector.shape_cast %32 : vector<128xf32> to vector<1x128xf32>
    %34 = vector.broadcast %33 : vector<1x128xf32> to vector<16x128xf32>
    %35 = arith.addf %30, %34 : vector<16x128xf32>
    %cst_17 = arith.constant 0.000000e+00 : f32
    %36 = vector.broadcast %cst_17 : f32 to vector<16x128xf32>
    %37 = arith.maximumf %35, %36 : vector<16x128xf32>
    %c0_18 = arith.constant 0 : index
    %c0_19 = arith.constant 0 : index
    %38 = vector.load %arg6[%c0_18, %c0_19] : memref<128x8xf32, #tpu.memory_space<vmem>>, vector<128x8xf32>
    %cst_20 = arith.constant dense<0.000000e+00> : vector<16x8xf32>
    %39 = tpu.matmul %37, %38, %cst_20 {dimension_numbers = #tpu.dot_dimension_numbers<[1], [0], [0], [1], [0, 0, 1, 1], [], []>} : vector<16x128xf32>, vector<128x8xf32>, vector<16x8xf32> -> vector<16x8xf32>
    %40 = vector.extract_strided_slice %0 {offsets = [4, 0], sizes = [1, 8], strides = [1, 1]} : vector<8x128xf32> to vector<1x8xf32>
    %41 = vector.shape_cast %40 : vector<1x8xf32> to vector<8xf32>
    %42 = vector.shape_cast %41 : vector<8xf32> to vector<1x8xf32>
    %43 = vector.broadcast %42 : vector<1x8xf32> to vector<16x8xf32>
    %44 = arith.addf %39, %43 : vector<16x8xf32>
    %c0_21 = arith.constant 0 : index
    %c0_22 = arith.constant 0 : index
    %45 = vector.load %arg8[%c0_21, %c0_22] : memref<16x8xf32, #tpu.memory_space<vmem>>, vector<16x8xf32>
    tpu.vector_store %arg8[%c0_21, %c0_22], %44 {strides = array<i32>} : memref<16x8xf32, #tpu.memory_space<vmem>>, vector<16x8xf32>,
    return
  }
  func.func @transform_0(%arg0: i32) -> (i32, i32) {
    %c0_i32 = arith.constant 0 : i32
    %c0_i32_0 = arith.constant 0 : i32
    return %arg0, %c0_i32 : i32, i32
  }
  func.func @transform_1(%arg0: i32) -> (i32, i32) {
    %c0_i32 = arith.constant 0 : i32
    %c0_i32_0 = arith.constant 0 : i32
    %c0_i32_1 = arith.constant 0 : i32
    return %c0_i32, %c0_i32_0 : i32, i32
  }
  func.func @transform_2(%arg0: i32) -> (i32, i32) {
    %c0_i32 = arith.constant 0 : i32
    %c0_i32_0 = arith.constant 0 : i32
    %c0_i32_1 = arith.constant 0 : i32
    return %c0_i32, %c0_i32_0 : i32, i32
  }
  func.func @transform_3(%arg0: i32) -> (i32, i32) {
    %c0_i32 = arith.constant 0 : i32
    %c0_i32_0 = arith.constant 0 : i32
    %c0_i32_1 = arith.constant 0 : i32
    return %c0_i32, %c0_i32_0 : i32, i32
  }
  func.func @transform_4(%arg0: i32) -> (i32, i32) {
    %c0_i32 = arith.constant 0 : i32
    %c0_i32_0 = arith.constant 0 : i32
    %c0_i32_1 = arith.constant 0 : i32
    return %c0_i32, %c0_i32_0 : i32, i32
  }
  func.func @transform_5(%arg0: i32) -> (i32, i32) {
    %c0_i32 = arith.constant 0 : i32
    %c0_i32_0 = arith.constant 0 : i32
    %c0_i32_1 = arith.constant 0 : i32
    return %c0_i32, %c0_i32_0 : i32, i32
  }
  func.func @transform_6(%arg0: i32) -> (i32, i32) {
    %c0_i32 = arith.constant 0 : i32
    %c0_i32_0 = arith.constant 0 : i32
    %c0_i32_1 = arith.constant 0 : i32
    return %c0_i32, %c0_i32_0 : i32, i32
  }
  func.func @transform_7(%arg0: i32) -> (i32, i32) {
    %c0_i32 = arith.constant 0 : i32
    %c0_i32_0 = arith.constant 0 : i32
    return %arg0, %c0_i32 : i32, i32
  }
}

</mosaic_0001>

<bundles_post_ra>
// kernel: _forward_impl.1
= control target key start
LH: loop header
LB: loop body
LE: loop exit
PB: predicated region body
PF: predicated region fallthrough
CT: control target
= control target key end

     0   :  { %12 = vsyncpa [#allocation3], 0  ;;  %s1152_s0 = inlined_call_operand.vmem [shape: f32[16,16], index: 0, kind: input, shape index: {}]   ;;  %s1153_s1 = inlined_call_operand.vmem [shape: f32[16,128], index: 1, kind: input, shape index: {}]   ;;  %s1154_s2 = inlined_call_operand.vmem [shape: f32[128,128], index: 2, kind: input, shape index: {}]   ;;  %s1155_s3 = inlined_call_operand.hbm [shape: f32[128,128], index: 3, kind: input, shape index: {}]   ;;  %s1156_s4 = inlined_call_operand.hbm [shape: f32[128,128], index: 4, kind: input, shape index: {}]   ;;  %s1157_s5 = inlined_call_operand.vmem [shape: f32[128,8], index: 5, kind: input, shape index: {}]   ;;  %s1158_s6 = inlined_call_operand.vmem [shape: f32[8,128], index: 6, kind: input, shape index: {}]   ;;  %s1159_s7 = inlined_call_operand.vmem [shape: f32[16,8], index: 7, kind: output, shape index: {}]  }
   0x1   :  { %13 = vsyncpa [#allocation5], 0  ;;  %s951_s24 = smov [#allocation2]   ;;  %s903_s28 = scalar_lea.hbm %s1155_s3, 2048 }
   0x2   :  { %s25_s25 = sshll.u32 %s951_s24, 4  ;;  %p904_p0 = scmp.ne.s32.totalorder %s1155_s3, %s903_s28  ;;  %s26_s25 = int_to_ptr.vmem [resolvable:$true] %s25_s25 }
   0x3   :  { %p907_p1 = scmp.lt.u32.totalorder %s903_s28, %s1155_s3 }
   0x5   :  { %p909_p2 = pnand %p907_p1, %p904_p0 }
   0x7   :  { %912 = shalt.err (!%p909_p2)
}
   0x8   :  { %s913_s10 = scalar_lea.vmem %s26_s25, 2048  ;;  %p918_p4 = scmp.lt.s32.totalorder %s26_s25, %s26_s25 }
   0x9   :  { %p914_p3 = scmp.ne.s32.totalorder %s26_s25, %s913_s10  ;;  %p919_p5 = scmp.lt.s32.totalorder %s913_s10, %s913_s10 }
   0xb   :  { %p920_p6 = por %p919_p5, %p918_p4 }
   0xd   :  { %p921_p7 = pnand %p920_p6, %p914_p3 }
   0xf   :  { %924 = shalt.err (!%p921_p7)
}
  0x10   :  { %s952_s11 = smov 128   ;;  %s953_s12 = smov 8  }
  0x11   :  { %31 = dma.hbm_to_vmem [thread:$0]  %s1155_s3, 2048, %s26_s25, [#allocation3], %s952_s11, %s952_s11, %s953_s12  }
  0x12   :  { %s954_s15 = smov [#allocation4]   ;;  %s925_s19 = scalar_lea.hbm %s1156_s4, 2048 }
  0x13   :  { %s37_s16 = sshll.u32 %s954_s15, 4  ;;  %p926_p8 = scmp.ne.s32.totalorder %s1156_s4, %s925_s19  ;;  %s38_s16 = int_to_ptr.vmem [resolvable:$true] %s37_s16 }
  0x14   :  { %p929_p9 = scmp.lt.u32.totalorder %s925_s19, %s1156_s4 }
  0x16   :  { %p931_p10 = pnand %p929_p9, %p926_p8 }
  0x18   :  { %934 = shalt.err (!%p931_p10)
}
  0x19   :  { %s935_s24 = scalar_lea.vmem %s38_s16, 2048  ;;  %p940_p12 = scmp.lt.s32.totalorder %s38_s16, %s38_s16 }
  0x1a   :  { %p936_p11 = scmp.ne.s32.totalorder %s38_s16, %s935_s24  ;;  %p941_p13 = scmp.lt.s32.totalorder %s935_s24, %s935_s24 }
  0x1c   :  { %p942_p0 = por %p941_p13, %p940_p12 }
  0x1e   :  { %p943_p1 = pnand %p942_p0, %p936_p11 }
  0x20   :  { %946 = shalt.err (!%p943_p1)
}
  0x21   :  { %43 = dma.hbm_to_vmem [thread:$0]  %s1156_s4, 2048, %s38_s16, [#allocation5], %s952_s11, %s952_s11, %s953_s12  }
  0x22   :  { %947 = dma.done.wait [#allocation3], 2048  }
  0x23   :  { %948 = vsyncadd [#allocation3], 4294965248 }
  0x24   :  { %949 = dma.done.wait [#allocation5], 2048  }
  0x25   :  { %950 = vsyncadd [#allocation5], 4294965248  ;;  %vm63_vm0 = vcmask 130048   ;;  %v57_v0 = vld [vmem:[%s1153_s1] sm:$0xff]  ;;  %v58_v1 = vld [vmem:[%s1153_s1 + $0x8] sm:$0xff]  ;;  %v59_v50 = vlaneseq  ;;  %vm533_vm1 = vcmask 64512  }
  0x26   :  { %v55_v2 = vld [vmem:[%s1152_s0] sm:$0xff]  ;;  %v767_v3 = vpack.c.bf16 %v58_v1, %v57_v0  ;;  %v148_v5 = vld [vmem:[%s1154_s2 + $0x8] sm:$0xff]  ;;  %v149_v7 = vld [vmem:[%s1154_s2 + $0x10] sm:$0xff] }
  0x27   :  { %624 = vmatprep.mubr.msk.f32.mxu0 %vm63_vm0, %v55_v2  ;;  %v147_v4 = vld [vmem:[%s1154_s2] sm:$0xff]  ;;  %v150_v8 = vld [vmem:[%s1154_s2 + $0x18] sm:$0xff]  ;;  %v152_v11 = vld [vmem:[%s1154_s2 + $0x28] sm:$0xff]  ;;  %v1081_v51 = vshrl.u32 %v59_v50, 7 }
  0x28   :  { %v771_v6 = vpack.c.bf16 %v148_v5, %v147_v4  ;;  %768 = vmatprep.subr.bf16.mxu0 %v767_v3  ;;  %v775_v9 = vpack.c.bf16 %v150_v8, %v149_v7  ;;  %v151_v10 = vld [vmem:[%s1154_s2 + $0x20] sm:$0xff]  ;;  %v56_v12 = vld [vmem:[%s1152_s0 + $0x8] sm:$0xff]  ;;  %v153_v14 = vld [vmem:[%s1154_s2 + $0x30] sm:$0xff] }
  0x29   :  { %770 = vmatpush3.bf16.msra.mxu0 %v767_v3  ;;  %v779_v13 = vpack.c.bf16 %v152_v11, %v151_v10  ;;  %v154_v15 = vld [vmem:[%s1154_s2 + $0x38] sm:$0xff]  ;;  %v155_v17 = vld [vmem:[%s1154_s2 + $0x40] sm:$0xff]  ;;  %v156_v18 = vld [vmem:[%s1154_s2 + $0x48] sm:$0xff]  ;;  %v61_v52 = vsub.s32 0, %v1081_v51 }
  0x2a   :  { %772 = vmatprep.subr.bf16.mxu1 %v771_v6  ;;  %v783_v16 = vpack.c.bf16 %v154_v15, %v153_v14  ;;  %v787_v19 = vpack.c.bf16 %v156_v18, %v155_v17  ;;  %v157_v20 = vld [vmem:[%s1154_s2 + $0x50] sm:$0xff]  ;;  %v158_v21 = vld [vmem:[%s1154_s2 + $0x58] sm:$0xff]  ;;  %v159_v23 = vld [vmem:[%s1154_s2 + $0x60] sm:$0xff] }
  0x2b   :  { %774 = vmatpush3.bf16.msra.mxu1 %v771_v6  ;;  %v791_v22 = vpack.c.bf16 %v158_v21, %v157_v20  ;;  %v160_v24 = vld [vmem:[%s1154_s2 + $0x68] sm:$0xff]  ;;  %v161_v26 = vld [vmem:[%s1154_s2 + $0x70] sm:$0xff]  ;;  %v162_v27 = vld [vmem:[%s1154_s2 + $0x78] sm:$0xff]  ;;  %v165_v21 = vsub.s32 1, %v1081_v51 }
  0x2c   :  { %776 = vmatprep.subr.bf16.mxu1 %v775_v9  ;;  %625 = vmatmul.mubr.msk.f32.vlgmr.msra.gmra.mrb[0].mxu0 %vm63_vm0, %v56_v12  ;;  %v795_v25 = vpack.c.bf16 %v160_v24, %v159_v23  ;;  %v799_v28 = vpack.c.bf16 %v162_v27, %v161_v26  ;;  %v244_v29 = vld [vmem:[#allocation2] sm:$0xff]  ;;  %v245_v30 = vld [vmem:[#allocation2 + $0x8] sm:$0xff]  ;;  %v246_v31 = vld [vmem:[#allocation2 + $0x10] sm:$0xff] }
  0x2d   :  { %v803_v32 = vpack.c.bf16 %v245_v30, %v244_v29  ;;  %v247_v33 = vld [vmem:[#allocation2 + $0x18] sm:$0xff]  ;;  %v248_v35 = vld [vmem:[#allocation2 + $0x20] sm:$0xff]  ;;  %v249_v36 = vld [vmem:[#allocation2 + $0x28] sm:$0xff] }
  0x2e   :  { %v807_v34 = vpack.c.bf16 %v247_v33, %v246_v31  ;;  %v811_v37 = vpack.c.bf16 %v249_v36, %v248_v35  ;;  %v250_v38 = vld [vmem:[#allocation2 + $0x30] sm:$0xff]  ;;  %v251_v39 = vld [vmem:[#allocation2 + $0x38] sm:$0xff]  ;;  %v252_v41 = vld [vmem:[#allocation2 + $0x40] sm:$0xff] }
  0x2f   :  { %778 = vmatpush3.bf16.msra.mxu1 %v775_v9  ;;  %804 = vmatprep.subr.bf16.mxu0 %v803_v32  ;;  %v815_v40 = vpack.c.bf16 %v251_v39, %v250_v38  ;;  %v253_v42 = vld [vmem:[#allocation2 + $0x48] sm:$0xff]  ;;  %v254_v44 = vld [vmem:[#allocation2 + $0x50] sm:$0xff]  ;;  %v255_v45 = vld [vmem:[#allocation2 + $0x58] sm:$0xff] }
  0x30   :  { %780 = vmatprep.subr.bf16.mxu1 %v779_v13  ;;  %806 = vmatpush3.bf16.msra.mxu0 %v803_v32  ;;  %v819_v43 = vpack.c.bf16 %v253_v42, %v252_v41  ;;  %v823_v46 = vpack.c.bf16 %v255_v45, %v254_v44  ;;  %v256_v47 = vld [vmem:[#allocation2 + $0x60] sm:$0xff]  ;;  %v257_v48 = vld [vmem:[#allocation2 + $0x68] sm:$0xff]  ;;  %v258_v61 = vld [vmem:[#allocation2 + $0x70] sm:$0xff] }
  0x31   :  { %808 = vmatprep.subr.bf16.mxu0 %v807_v34  ;;  %v827_v49 = vpack.c.bf16 %v257_v48, %v256_v47  ;;  %v1087_v53 = vld [vmem:[%s1158_s6] sm:$0xff]  ;;  %v259_v62 = vld [vmem:[#allocation2 + $0x78] sm:$0xff]  ;;  %v342_v1 = vld [vmem:[#allocation4 + $0x8] sm:$0xff] }
  0x32   :  { %v62_v54 = vrot.slane %v1087_v53, %v61_v52  ;;  %v831_v63 = vpack.c.bf16 %v259_v62, %v258_v61  ;;  %v341_v0 = vld [vmem:[#allocation4] sm:$0xff]  ;;  %v343_v2 = vld [vmem:[#allocation4 + $0x10] sm:$0xff]  ;;  %v344_v4 = vld [vmem:[#allocation4 + $0x18] sm:$0xff] }
  0x33   :  { %782 = vmatpush3.bf16.msra.mxu1 %v779_v13  ;;  %v835_v3 = vpack.c.bf16 %v342_v1, %v341_v0  ;;  %v839_v5 = vpack.c.bf16 %v344_v4, %v343_v2  ;;  %v345_v6 = vld [vmem:[#allocation4 + $0x20] sm:$0xff]  ;;  %v346_v7 = vld [vmem:[#allocation4 + $0x28] sm:$0xff]  ;;  %v347_v9 = vld [vmem:[#allocation4 + $0x30] sm:$0xff]  ;;  %v359_v2 = vsub.s32 3, %v1081_v51 }
  0x34   :  { %784 = vmatprep.subr.bf16.mxu1 %v783_v16  ;;  %810 = vmatpush3.bf16.msra.mxu0 %v807_v34  ;;  %v843_v8 = vpack.c.bf16 %v346_v7, %v345_v6  ;;  %v348_v10 = vld [vmem:[#allocation4 + $0x38] sm:$0xff]  ;;  %v349_v12 = vld [vmem:[#allocation4 + $0x40] sm:$0xff]  ;;  %v350_v13 = vld [vmem:[#allocation4 + $0x48] sm:$0xff] }
  0x35   :  { %812 = vmatprep.subr.bf16.mxu0 %v811_v37  ;;  %v847_v11 = vpack.c.bf16 %v348_v10, %v347_v9  ;;  %v851_v14 = vpack.c.bf16 %v350_v13, %v349_v12  ;;  %v351_v15 = vld [vmem:[#allocation4 + $0x50] sm:$0xff]  ;;  %v353_v18 = vld [vmem:[#allocation4 + $0x60] sm:$0xff]  ;;  %v356_v30 = vld [vmem:[#allocation4 + $0x78] sm:$0xff]  ;;  %v456_v10 = vsub.s32 4, %v1081_v51 }
  0x36   :  { %v355_v29 = vld [vmem:[#allocation4 + $0x70] sm:$0xff]  ;;  %v438_v32 = vld [vmem:[%s1157_s5] sm:$0xff]  ;;  %v439_v33 = vld [vmem:[%s1157_s5 + $0x8] sm:$0xff] }
  0x37   :  { %786 = vmatpush3.bf16.msra.mxu1 %v783_v16  ;;  %v352_v16 = vld [vmem:[#allocation4 + $0x58] sm:$0xff]  ;;  %v863_v31 = vpack.c.bf16 %v356_v30, %v355_v29  ;;  %v440_v34 = vld [vmem:[%s1157_s5 + $0x10] sm:$0xff]  ;;  %v867_v35 = vpack.c.bf16 %v439_v33, %v438_v32  ;;  %v442_v38 = vld [vmem:[%s1157_s5 + $0x20] sm:$0xff] }
  0x38   :  { %788 = vmatprep.subr.bf16.mxu1 %v787_v19  ;;  %814 = vmatpush3.bf16.msra.mxu0 %v811_v37  ;;  %v855_v17 = vpack.c.bf16 %v352_v16, %v351_v15  ;;  %v441_v36 = vld [vmem:[%s1157_s5 + $0x18] sm:$0xff]  ;;  %v443_v39 = vld [vmem:[%s1157_s5 + $0x28] sm:$0xff]  ;;  %v444_v41 = vld [vmem:[%s1157_s5 + $0x30] sm:$0xff] }
  0x39   :  { %816 = vmatprep.subr.bf16.mxu0 %v815_v40  ;;  %v871_v37 = vpack.c.bf16 %v441_v36, %v440_v34  ;;  %v445_v42 = vld [vmem:[%s1157_s5 + $0x38] sm:$0xff]  ;;  %v446_v44 = vld [vmem:[%s1157_s5 + $0x40] sm:$0xff]  ;;  %v447_v45 = vld [vmem:[%s1157_s5 + $0x48] sm:$0xff] }
  0x3a   :  { %v448_v47 = vld [vmem:[%s1157_s5 + $0x50] sm:$0xff]  ;;  %v449_v48 = vld [vmem:[%s1157_s5 + $0x58] sm:$0xff]  ;;  %v450_v50 = vld [vmem:[%s1157_s5 + $0x60] sm:$0xff] }
  0x3b   :  { %790 = vmatpush3.bf16.msra.mxu1 %v787_v19  ;;  %v354_v19 = vld [vmem:[#allocation4 + $0x68] sm:$0xff]  ;;  %v453_v0 = vld [vmem:[%s1157_s5 + $0x78] sm:$0xff] }
  0x3c   :  { %792 = vmatprep.subr.bf16.mxu1 %v791_v22  ;;  %818 = vmatpush3.bf16.msra.mxu0 %v815_v40  ;;  %v859_v20 = vpack.c.bf16 %v354_v19, %v353_v18  ;;  %v875_v40 = vpack.c.bf16 %v443_v39, %v442_v38  ;;  %v451_v52 = vld [vmem:[%s1157_s5 + $0x68] sm:$0xff] }
  0x3d   :  { %820 = vmatprep.subr.bf16.mxu0 %v819_v43 }
  0x3f   :  { %794 = vmatpush3.bf16.msra.mxu1 %v791_v22  ;;  %v166_v22 = vrot.slane %v1087_v53, %v165_v21 }
  0x40   :  { %796 = vmatprep.subr.bf16.mxu1 %v795_v25  ;;  %822 = vmatpush3.bf16.msra.mxu0 %v819_v43  ;;  %v879_v43 = vpack.c.bf16 %v445_v42, %v444_v41 }
  0x41   :  { %824 = vmatprep.subr.bf16.mxu0 %v823_v46 }
  0x43   :  { %798 = vmatpush3.bf16.msra.mxu1 %v795_v25 }
  0x44   :  { %800 = vmatprep.subr.bf16.mxu1 %v799_v28  ;;  %826 = vmatpush3.bf16.msra.mxu0 %v823_v46  ;;  %v883_v46 = vpack.c.bf16 %v447_v45, %v446_v44 }
  0x45   :  { %828 = vmatprep.subr.bf16.mxu0 %v827_v49 }
  0x47   :  { %802 = vmatpush3.bf16.msra.mxu1 %v799_v28 }
  0x48   :  { %830 = vmatpush3.bf16.msra.mxu0 %v827_v49  ;;  %836 = vmatprep.subr.bf16.mxu1 %v835_v3  ;;  %v887_v49 = vpack.c.bf16 %v449_v48, %v448_v47 }
  0x49   :  { %832 = vmatprep.subr.bf16.mxu0 %v831_v63 }
  0x4c   :  { %834 = vmatpush3.bf16.msra.mxu0 %v831_v63  ;;  %v452_v63 = vld [vmem:[%s1157_s5 + $0x70] sm:$0xff] }
  0x4d   :  { %868 = vmatprep.subr.bf16.mxu0 %v867_v35  ;;  %v895_v1 = vpack.c.bf16 %v453_v0, %v452_v63 }
  0xff   :  { %v626_v55 = vpop.f32.mrb[0].mxu0 }
 0x100   :  { %v142_v56 = vadd.f32 %v626_v55, %v62_v54  ;;  %v136_v57 = vpop.f32.mrb[1].mxu0  ;;  %v262_v55 = vsub.s32 2, %v1081_v51 }
 0x101   :  { %v137_v58 = vadd.f32 %v136_v57, %v62_v54  ;;  %v891_v54 = vpack.c.bf16 %v451_v52, %v450_v50 }
 0x102   :  { %v146_v60 = vmax.f32 %v142_v56, 0.0  ;;  %v263_v56 = vrot.slane %v1087_v53, %v262_v55 }
 0x103   :  { %v145_v59 = vmax.f32 %v137_v58, 0.0 }
 0x105   :  { %659 = vmatprep.mubr.f32.mxu1 %v145_v59 }
 0x106   :  { %660 = vmatmul.mubr.f32.vlgmr.msra.gmra.mrb[0].mxu1 %v146_v60 }
 0x107   :  { %838 = vmatpush3.bf16.msra.mxu1 %v835_v3  ;;  %v360_v3 = vrot.slane %v1087_v53, %v359_v2 }
 0x108   :  { %840 = vmatprep.subr.bf16.mxu1 %v839_v5 }
 0x10b   :  { %842 = vmatpush3.bf16.msra.mxu1 %v839_v5 }
 0x10c   :  { %844 = vmatprep.subr.bf16.mxu1 %v843_v8 }
 0x10f   :  { %846 = vmatpush3.bf16.msra.mxu1 %v843_v8 }
 0x110   :  { %848 = vmatprep.subr.bf16.mxu1 %v847_v11 }
 0x113   :  { %850 = vmatpush3.bf16.msra.mxu1 %v847_v11  ;;  %v457_v11 = vrot.slane %v1087_v53, %v456_v10 }
 0x114   :  { %852 = vmatprep.subr.bf16.mxu1 %v851_v14 }
 0x117   :  { %854 = vmatpush3.bf16.msra.mxu1 %v851_v14 }
 0x118   :  { %856 = vmatprep.subr.bf16.mxu1 %v855_v17 }
 0x11b   :  { %858 = vmatpush3.bf16.msra.mxu1 %v855_v17 }
 0x11c   :  { %860 = vmatprep.subr.bf16.mxu1 %v859_v20 }
 0x11f   :  { %862 = vmatpush3.bf16.msra.mxu1 %v859_v20 }
 0x120   :  { %864 = vmatprep.subr.bf16.mxu1 %v863_v31 }
 0x123   :  { %866 = vmatpush3.bf16.msra.mxu1 %v863_v31 }
 0x1d9   :  { %v661_v23 = vpop.f32.mrb[0].mxu1 }
 0x1da   :  { %v239_v24 = vadd.f32 %v661_v23, %v166_v22  ;;  %v233_v25 = vpop.f32.mrb[1].mxu1 }
 0x1db   :  { %v234_v26 = vadd.f32 %v233_v25, %v166_v22 }
 0x1dc   :  { %v243_v28 = vmax.f32 %v239_v24, 0.0 }
 0x1dd   :  { %v242_v27 = vmax.f32 %v234_v26, 0.0 }
 0x1df   :  { %694 = vmatprep.mubr.f32.mxu0 %v242_v27 }
 0x1e0   :  { %695 = vmatmul.mubr.f32.vlgmr.msra.gmra.mrb[2].mxu0 %v243_v28 }
 0x1e1   :  { %870 = vmatpush3.bf16.msra.mxu0 %v867_v35 }
 0x1e2   :  { %872 = vmatprep.subr.bf16.mxu0 %v871_v37 }
 0x1e5   :  { %874 = vmatpush3.bf16.msra.mxu0 %v871_v37 }
 0x1e6   :  { %876 = vmatprep.subr.bf16.mxu0 %v875_v40 }
 0x1e9   :  { %878 = vmatpush3.bf16.msra.mxu0 %v875_v40 }
 0x1ea   :  { %880 = vmatprep.subr.bf16.mxu0 %v879_v43 }
 0x1ed   :  { %882 = vmatpush3.bf16.msra.mxu0 %v879_v43 }
 0x1ee   :  { %884 = vmatprep.subr.bf16.mxu0 %v883_v46 }
 0x1f1   :  { %886 = vmatpush3.bf16.msra.mxu0 %v883_v46 }
 0x1f2   :  { %888 = vmatprep.subr.bf16.mxu0 %v887_v49 }
 0x1f5   :  { %890 = vmatpush3.bf16.msra.mxu0 %v887_v49 }
 0x1f6   :  { %892 = vmatprep.subr.bf16.mxu0 %v891_v54 }
 0x1f9   :  { %894 = vmatpush3.bf16.msra.mxu0 %v891_v54 }
 0x1fa   :  { %896 = vmatprep.subr.bf16.mxu0 %v895_v1 }
 0x1fd   :  { %898 = vmatpush3.bf16.msra.mxu0 %v895_v1 }
 0x2b3   :  { %v696_v57 = vpop.f32.mrb[2].mxu0 }
 0x2b4   :  { %v336_v58 = vadd.f32 %v696_v57, %v263_v56  ;;  %v330_v59 = vpop.f32.mrb[3].mxu0 }
 0x2b5   :  { %v331_v60 = vadd.f32 %v330_v59, %v263_v56 }
 0x2b6   :  { %v340_v62 = vmax.f32 %v336_v58, 0.0 }
 0x2b7   :  { %v339_v61 = vmax.f32 %v331_v60, 0.0 }
 0x2b9   :  { %729 = vmatprep.mubr.f32.mxu1 %v339_v61 }
 0x2ba   :  { %730 = vmatmul.mubr.f32.vlgmr.msra.gmra.mrb[2].mxu1 %v340_v62 }
 0x38d   :  { %v731_v4 = vpop.f32.mrb[2].mxu1 }
 0x38e   :  { %v433_v5 = vadd.f32 %v731_v4, %v360_v3  ;;  %v427_v6 = vpop.f32.mrb[3].mxu1 }
 0x38f   :  { %v428_v7 = vadd.f32 %v427_v6, %v360_v3 }
 0x390   :  { %v437_v9 = vmax.f32 %v433_v5, 0.0 }
 0x391   :  { %v436_v8 = vmax.f32 %v428_v7, 0.0 }
 0x393   :  { %764 = vmatprep.mubr.f32.mxu0 %v436_v8 }
 0x394   :  { %765 = vmatmul.mubr.f32.vlgmr.msra.gmra.mrb[4].mxu0 %v437_v9 }
 0x467   :  { %v766_v12 = vpop.f32.mrb[4].mxu0 }
 0x468   :  { %v530_v13 = vadd.f32 %v766_v12, %v457_v11  ;;  %v524_v14 = vpop.f32.mrb[5].mxu0 }
 0x469   :  { %v525_v15 = vadd.f32 %v524_v14, %v457_v11 }
 0x46a   :  { %535 = vst.msk [vmem:[%s1159_s7 + $0x8] sm:$0xff] %vm533_vm1, %v530_v13 }
 0x46b   :  { %534 = vst.msk [vmem:[%s1159_s7] sm:$0xff] %vm533_vm1, %v525_v15 }
 0x46c   :  { %540 = vsyncpa [#allocation3], 1 }
 0x46d   :  { %541 = vsyncpa [#allocation5], 1 }

</bundles_post_ra>
